<compile_context>
chip_gen: v5e
topology: v5e:2x2
jax: 0.10.0
libtpu: 0.0.40
codegen_flags: <defaults>
</compile_context>

<pallas_src>
import functools
import math

import jax
import jax.numpy as jnp
from jax import lax
from jax.experimental import pallas as pl
from jax.experimental.pallas import tpu as pltpu

LANES = 128
SUBLANES = 8


def _jaccard_sums_kernel(p_ref, g_ref, out_ref, inter_acc, plus_acc, *,
                         total_rows, tile_rows, steps_per_core, mask_from):
    """Per-core partial sums of p*g and p+g over a [rows, 128] slab.

    out_ref block: (1, 2, 8, 128) -- [0] = sum(p*g) partials, [1] = sum(p+g).
    inter_acc / plus_acc: (8, 128) vreg-sized running partials.
    """
    c = pl.program_id(0)            # core (parallel axis)
    i = pl.program_id(1)            # step within this core (reduction axis)
    b = c * steps_per_core + i      # logical block index into the row slab

    @pl.when(i == 0)
    def _():
        inter_acc[...] = jnp.zeros_like(inter_acc)
        plus_acc[...] = jnp.zeros_like(plus_acc)

    p = p_ref[...].astype(jnp.float32)
    g = g_ref[...].astype(jnp.float32)

    def accumulate(pv, gv):
        # Fold (tile_rows, 128) down to one (8, 128) vreg block: pure VALU
        # adds across sublane groups, single accumulator update per step.
        inter_acc[...] += jnp.sum((pv * gv).reshape(-1, SUBLANES, LANES), axis=0)
        plus_acc[...] += jnp.sum((pv + gv).reshape(-1, SUBLANES, LANES), axis=0)

    if mask_from is None:
        # Fast path: every block is fully valid, no masking anywhere.
        accumulate(p, g)
    else:
        @pl.when(b < mask_from)
        def _():
            accumulate(p, g)

        @pl.when(b >= mask_from)
        def _():
            # Last (ragged) real block and/or phantom blocks of the core
            # split: zero rows past the logical end of the slab before use.
            row = lax.broadcasted_iota(jnp.int32, p.shape, 0) + b * tile_rows
            valid = row < total_rows
            accumulate(jnp.where(valid, p, 0.0), jnp.where(valid, g, 0.0))

    @pl.when(i == steps_per_core - 1)
    def _():
        out_ref[0, 0, :, :] = inter_acc[...]
        out_ref[0, 1, :, :] = plus_acc[...]


def _crop_to_identical_size(a, b):
    # Semantics of hcat's crop_to_identical_size: crop both tensors to the
    # elementwise-minimum shape along every axis (no-op when shapes match).
    assert a.ndim == b.ndim
    mins = [min(sa, sb) for sa, sb in zip(a.shape, b.shape)]
    sl = tuple(slice(0, m) for m in mins)
    return a[sl], b[sl]


def jaccard_loss(predicted, ground_truth, eps=1e-10, tile_rows=4096,
                 num_cores=2):
    predicted, ground_truth = _crop_to_identical_size(predicted, ground_truth)
    n = math.prod(predicted.shape)

    p_flat = jnp.ravel(predicted)
    g_flat = jnp.ravel(ground_truth)

    rows = n // LANES
    if rows < SUBLANES:
        rows = 0                       # too tiny for a tile; do it all in JAX
    n_main = rows * LANES

    inter = jnp.float32(0.0)
    plus = jnp.float32(0.0)

    if rows > 0:
        if n_main == n:
            p2 = p_flat.reshape(rows, LANES)        # free view (aligned path)
            g2 = g_flat.reshape(rows, LANES)
        else:
            p2 = p_flat[:n_main].reshape(rows, LANES)
            g2 = g_flat[:n_main].reshape(rows, LANES)

        # Tile rows: multiple of 8, never larger than the slab.
        tr = max(SUBLANES, (min(tile_rows, rows) // SUBLANES) * SUBLANES)
        steps_total = pl.cdiv(rows, tr)
        nc = max(1, min(num_cores, steps_total))
        spc = pl.cdiv(steps_total, nc)              # steps per core

        # Only the trailing (partial / phantom) blocks need the row mask.
        if rows % tr != 0:
            mask_from = steps_total - 1
        elif nc * spc > steps_total:
            mask_from = steps_total
        else:
            mask_from = None

        last_block = steps_total - 1

        def in_map(c, i):
            # Clamp phantom blocks (core-split overhang) onto the last real
            # block; their contribution is masked to zero in the kernel.
            return (jnp.minimum(c * spc + i, last_block), 0)

        kernel = functools.partial(
            _jaccard_sums_kernel,
            total_rows=rows,
            tile_rows=tr,
            steps_per_core=spc,
            mask_from=mask_from,
        )

        itemsize = max(jnp.dtype(p2.dtype).itemsize,
                       jnp.dtype(g2.dtype).itemsize)
        block_bytes = tr * LANES
        # 2 inputs x 2 pipeline buffers + headroom for f32 temporaries.
        vmem_need = 2 * 2 * block_bytes * itemsize + 8 * block_bytes * 4
        vmem_limit = int(min(max(vmem_need, 32 * 1024 * 1024),
                             48 * 1024 * 1024))

        cost = pl.CostEstimate(
            flops=3 * n_main,
            transcendentals=0,
            bytes_accessed=int(
                p2.size * jnp.dtype(p2.dtype).itemsize
                + g2.size * jnp.dtype(g2.dtype).itemsize
                + nc * 2 * SUBLANES * LANES * 4),
        )

        partials = pl.pallas_call(
            kernel,
            out_shape=jax.ShapeDtypeStruct((nc, 2, SUBLANES, LANES),
                                           jnp.float32),
            grid_spec=pltpu.PrefetchScalarGridSpec(
                num_scalar_prefetch=0,
                grid=(nc, spc),
                in_specs=[
                    pl.BlockSpec((tr, LANES), in_map),
                    pl.BlockSpec((tr, LANES), in_map),
                ],
                out_specs=pl.BlockSpec(
                    (1, 2, SUBLANES, LANES), lambda c, i: (c, 0, 0, 0)),
                scratch_shapes=[
                    pltpu.VMEM((SUBLANES, LANES), jnp.float32),
                    pltpu.VMEM((SUBLANES, LANES), jnp.float32),
                ],
            ),
            compiler_params=pltpu.CompilerParams(
                dimension_semantics=("parallel", "arbitrary"),
                vmem_limit_bytes=vmem_limit,
            ),
            cost_estimate=cost,
        )(p2, g2)

        # Combine the per-core (8,128) partial blocks; 1024 parallel partials
        # are kept until this final f32 reduce (precision preserved).
        inter = jnp.sum(partials[:, 0])
        plus = jnp.sum(partials[:, 1])

    if n_main < n:
        # Lane-misaligned tail (< 128 elements) folded in with plain JAX —
        # avoids a full-tensor pad copy in front of the streaming kernel.
        pt = p_flat[n_main:].astype(jnp.float32)
        gt = g_flat[n_main:].astype(jnp.float32)
        inter = inter + jnp.sum(pt * gt)
        plus = plus + jnp.sum(pt + gt)

    # Finalize in the wrapper: eps stays a plain Python float.
    intersection = inter + eps
    union = plus - intersection + eps
    return jnp.reshape(1.0 - intersection / union, (1,))


def _reference(predicted, ground_truth, eps=1e-10):
    inter = jnp.sum(predicted * ground_truth) + eps
    union = jnp.sum(predicted + ground_truth) - inter + eps
    return 1.0 - inter / union


if __name__ == "__main__":
    key = jax.random.PRNGKey(0)
    kp, kg, kp2, kg2 = jax.random.split(key, 4)

    # [B, I, X, Y, Z] as in the PyTorch module.
    B, I, X, Y, Z = 2, 4, 8, 8, 8
    predicted = jax.nn.sigmoid(
        jax.random.normal(kp, (B, I, X, Y, Z), dtype=jnp.float32))
    ground_truth = (
        jax.random.uniform(kg, (B, I, X, Y, Z), dtype=jnp.float32) > 0.5
    ).astype(jnp.float32)

    ref = _reference(predicted, ground_truth)

    # Aligned fast path: one grid step, one core, no mask.
    loss = jax.block_until_ready(jaccard_loss(predicted, ground_truth))
    assert jnp.allclose(loss[0], ref, atol=1e-5, rtol=1e-5), (loss, ref)

    # Multi-step accumulation + 2-core partial-sum combine (grid (2, 2)).
    loss2 = jax.block_until_ready(
        jaccard_loss(predicted, ground_truth, tile_rows=8))
    assert jnp.allclose(loss2[0], ref, atol=1e-5, rtol=1e-5), (loss2, ref)

    # Ragged last tile (rows not a multiple of the tile) -> gated mask path.
    p3 = jax.nn.sigmoid(
        jax.random.normal(kp2, (2, 5, 4, 8, 8), dtype=jnp.float32))
    g3 = (jax.random.uniform(kg2, (2, 5, 4, 8, 8), dtype=jnp.float32) > 0.5
          ).astype(jnp.float32)
    loss3 = jax.block_until_ready(jaccard_loss(p3, g3))
    ref3 = _reference(p3, g3)
    assert jnp.allclose(loss3[0], ref3, atol=1e-5, rtol=1e-5), (loss3, ref3)

    # Lane-misaligned total size -> aligned prefix in-kernel + JAX tail.
    kp3, kg3 = jax.random.split(kg2)
    p4 = jax.nn.sigmoid(
        jax.random.normal(kp3, (2, 3, 7, 11, 5), dtype=jnp.float32))
    g4 = (jax.random.uniform(kg3, (2, 3, 7, 11, 5), dtype=jnp.float32) > 0.5
          ).astype(jnp.float32)
    loss4 = jax.block_until_ready(jaccard_loss(p4, g4))
    ref4 = _reference(p4, g4)
    assert jnp.allclose(loss4[0], ref4, atol=1e-5, rtol=1e-5), (loss4, ref4)

    print("KERNEL_OK")
</pallas_src>

<mosaic_0001>
module attributes {stable_mosaic.version = 11 : i64} {
  func.func @_jaccard_sums_kernel(%arg0: i32, %arg1: i32, %arg2: memref<32x128xf32, #tpu.memory_space<vmem>>, %arg3: memref<32x128xf32, #tpu.memory_space<vmem>>, %arg4: memref<1x2x8x128xf32, #tpu.memory_space<vmem>>, %arg5: memref<8x128xf32, #tpu.memory_space<vmem>>, %arg6: memref<8x128xf32, #tpu.memory_space<vmem>>) attributes {dimension_semantics = [#tpu.dimension_semantics<parallel>, #tpu.dimension_semantics<arbitrary>], iteration_bounds = array<i64: 1, 1>, scalar_prefetch = 0 : i64, scratch_operands = 2 : i64, tpu.core_type = #tpu.core_type<tc>, window_params = [{transform_indices = @transform_0, window_bounds = array<i64: 32, 128>}, {transform_indices = @transform_1, window_bounds = array<i64: 32, 128>}, {transform_indices = @transform_2, window_bounds = array<i64: 1, 2, 8, 128>}]} {
    %c0_i32 = arith.constant 0 : i32
    %0 = arith.cmpi eq, %arg1, %c0_i32 : i32
    %1 = arith.extui %0 : i1 to i32
    %c0_i32_0 = arith.constant 0 : i32
    %2 = arith.cmpi ne, %1, %c0_i32_0 : i32
    scf.if %2 {
      %cst_15 = arith.constant 0.000000e+00 : f32
      %20 = vector.broadcast %cst_15 : f32 to vector<8x128xf32>
      %c0_16 = arith.constant 0 : index
      %c0_17 = arith.constant 0 : index
      %21 = vector.load %arg5[%c0_16, %c0_17] : memref<8x128xf32, #tpu.memory_space<vmem>>, vector<8x128xf32>
      tpu.vector_store %arg5[%c0_16, %c0_17], %20 {strides = array<i32>} : memref<8x128xf32, #tpu.memory_space<vmem>>, vector<8x128xf32>,
      %cst_18 = arith.constant 0.000000e+00 : f32
      %22 = vector.broadcast %cst_18 : f32 to vector<8x128xf32>
      %c0_19 = arith.constant 0 : index
      %c0_20 = arith.constant 0 : index
      %23 = vector.load %arg6[%c0_19, %c0_20] : memref<8x128xf32, #tpu.memory_space<vmem>>, vector<8x128xf32>
      tpu.vector_store %arg6[%c0_19, %c0_20], %22 {strides = array<i32>} : memref<8x128xf32, #tpu.memory_space<vmem>>, vector<8x128xf32>,
    } else {
    }
    %c0 = arith.constant 0 : index
    %c0_1 = arith.constant 0 : index
    %3 = vector.load %arg2[%c0, %c0_1] : memref<32x128xf32, #tpu.memory_space<vmem>>, vector<32x128xf32>
    %c0_2 = arith.constant 0 : index
    %c0_3 = arith.constant 0 : index
    %4 = vector.load %arg3[%c0_2, %c0_3] : memref<32x128xf32, #tpu.memory_space<vmem>>, vector<32x128xf32>
    %c0_4 = arith.constant 0 : index
    %c0_5 = arith.constant 0 : index
    %5 = vector.load %arg5[%c0_4, %c0_5] : memref<8x128xf32, #tpu.memory_space<vmem>>, vector<8x128xf32>
    %6 = arith.mulf %3, %4 : vector<32x128xf32>
    %7 = vector.shape_cast %6 : vector<32x128xf32> to vector<4x8x128xf32>
    %cst = arith.constant dense<0.000000e+00> : vector<8x128xf32>
    %8 = vector.multi_reduction <add>, %7, %cst [0] : vector<4x8x128xf32> to vector<8x128xf32>
    %9 = arith.addf %5, %8 : vector<8x128xf32>
    %c0_6 = arith.constant 0 : index
    %c0_7 = arith.constant 0 : index
    %10 = vector.load %arg5[%c0_6, %c0_7] : memref<8x128xf32, #tpu.memory_space<vmem>>, vector<8x128xf32>
    tpu.vector_store %arg5[%c0_6, %c0_7], %9 {strides = array<i32>} : memref<8x128xf32, #tpu.memory_space<vmem>>, vector<8x128xf32>,
    %c0_8 = arith.constant 0 : index
    %c0_9 = arith.constant 0 : index
    %11 = vector.load %arg6[%c0_8, %c0_9] : memref<8x128xf32, #tpu.memory_space<vmem>>, vector<8x128xf32>
    %12 = arith.addf %3, %4 : vector<32x128xf32>
    %13 = vector.shape_cast %12 : vector<32x128xf32> to vector<4x8x128xf32>
    %cst_10 = arith.constant dense<0.000000e+00> : vector<8x128xf32>
    %14 = vector.multi_reduction <add>, %13, %cst_10 [0] : vector<4x8x128xf32> to vector<8x128xf32>
    %15 = arith.addf %11, %14 : vector<8x128xf32>
    %c0_11 = arith.constant 0 : index
    %c0_12 = arith.constant 0 : index
    %16 = vector.load %arg6[%c0_11, %c0_12] : memref<8x128xf32, #tpu.memory_space<vmem>>, vector<8x128xf32>
    tpu.vector_store %arg6[%c0_11, %c0_12], %15 {strides = array<i32>} : memref<8x128xf32, #tpu.memory_space<vmem>>, vector<8x128xf32>,
    %c0_i32_13 = arith.constant 0 : i32
    %17 = arith.cmpi eq, %arg1, %c0_i32_13 : i32
    %18 = arith.extui %17 : i1 to i32
    %c0_i32_14 = arith.constant 0 : i32
    %19 = arith.cmpi ne, %18, %c0_i32_14 : i32
    scf.if %19 {
      %c0_15 = arith.constant 0 : index
      %c0_16 = arith.constant 0 : index
      %20 = vector.load %arg5[%c0_15, %c0_16] : memref<8x128xf32, #tpu.memory_space<vmem>>, vector<8x128xf32>
      %c0_17 = arith.constant 0 : index
      %c0_18 = arith.constant 0 : index
      %c0_19 = arith.constant 0 : index
      %c0_20 = arith.constant 0 : index
      %21 = vector.load %arg4[%c0_17, %c0_18, %c0_19, %c0_20] : memref<1x2x8x128xf32, #tpu.memory_space<vmem>>, vector<1x1x8x128xf32>
      %22 = vector.shape_cast %21 : vector<1x1x8x128xf32> to vector<8x128xf32>
      %23 = vector.shape_cast %20 : vector<8x128xf32> to vector<1x1x8x128xf32>
      tpu.vector_store %arg4[%c0_17, %c0_18, %c0_19, %c0_20], %23 {strides = array<i32>} : memref<1x2x8x128xf32, #tpu.memory_space<vmem>>, vector<1x1x8x128xf32>,
      %c0_21 = arith.constant 0 : index
      %c0_22 = arith.constant 0 : index
      %24 = vector.load %arg6[%c0_21, %c0_22] : memref<8x128xf32, #tpu.memory_space<vmem>>, vector<8x128xf32>
      %c0_23 = arith.constant 0 : index
      %c1 = arith.constant 1 : index
      %c0_24 = arith.constant 0 : index
      %c0_25 = arith.constant 0 : index
      %25 = vector.load %arg4[%c0_23, %c1, %c0_24, %c0_25] : memref<1x2x8x128xf32, #tpu.memory_space<vmem>>, vector<1x1x8x128xf32>
      %26 = vector.shape_cast %25 : vector<1x1x8x128xf32> to vector<8x128xf32>
      %27 = vector.shape_cast %24 : vector<8x128xf32> to vector<1x1x8x128xf32>
      tpu.vector_store %arg4[%c0_23, %c1, %c0_24, %c0_25], %27 {strides = array<i32>} : memref<1x2x8x128xf32, #tpu.memory_space<vmem>>, vector<1x1x8x128xf32>,
    } else {
    }
    return
  }
  func.func @transform_0(%arg0: i32, %arg1: i32) -> (i32, i32) {
    %c1_i32 = arith.constant 1 : i32
    %0 = arith.muli %arg0, %c1_i32 : i32
    %1 = arith.addi %0, %arg1 : i32
    %c0_i32 = arith.constant 0 : i32
    %2 = arith.minsi %1, %c0_i32 : i32
    %c0_i32_0 = arith.constant 0 : i32
    %c0_i32_1 = arith.constant 0 : i32
    return %2, %c0_i32_0 : i32, i32
  }
  func.func @transform_1(%arg0: i32, %arg1: i32) -> (i32, i32) {
    %c1_i32 = arith.constant 1 : i32
    %0 = arith.muli %arg0, %c1_i32 : i32
    %1 = arith.addi %0, %arg1 : i32
    %c0_i32 = arith.constant 0 : i32
    %2 = arith.minsi %1, %c0_i32 : i32
    %c0_i32_0 = arith.constant 0 : i32
    %c0_i32_1 = arith.constant 0 : i32
    return %2, %c0_i32_0 : i32, i32
  }
  func.func @transform_2(%arg0: i32, %arg1: i32) -> (i32, i32, i32, i32) {
    %c0_i32 = arith.constant 0 : i32
    %c0_i32_0 = arith.constant 0 : i32
    %c0_i32_1 = arith.constant 0 : i32
    %c0_i32_2 = arith.constant 0 : i32
    return %arg0, %c0_i32, %c0_i32_0, %c0_i32_1 : i32, i32, i32, i32
  }
}

</mosaic_0001>

<bundles_post_ra>
// kernel: tpu_custom_call.1
= control target key start
LH: loop header
LB: loop body
LE: loop exit
PB: predicated region body
PF: predicated region fallthrough
CT: control target
= control target key end

     0   :  { %7 = vsyncpa [#allocation5], 0  ;;  %s251_s0 = inlined_call_operand.hbm [shape: f32[32,128], index: 0, kind: input, shape index: {}]   ;;  %s252_s1 = inlined_call_operand.hbm [shape: f32[32,128], index: 1, kind: input, shape index: {}]   ;;  %s253_s2 = inlined_call_operand.hbm [shape: f32[1,2,8,128], index: 2, kind: output, shape index: {}]  }
   0x1   :  { %8 = vsyncpa [#allocation8], 0 }
   0x2   :  { %9 = vsyncpa [#allocation6], 0  ;;  %s20_s11 = sshll.u32 %s251_s0, 4  ;;  %s213_s12 = smov [#allocation4]   ;;  %s21_s11 = int_to_ptr.hbm [resolvable:$true] %s20_s11 }
   0x3   :  { %s22_s13 = sshll.u32 %s213_s12, 4  ;;  %s39_s16 = sshll.u32 %s252_s1, 4  ;;  %s23_s13 = int_to_ptr.vmem [resolvable:$true] %s22_s13  ;;  %s40_s16 = int_to_ptr.hbm [resolvable:$true] %s39_s16 }
   0x4   :  { %s214_s17 = smov 128   ;;  %s215_s18 = smov 8  }
   0x5   :  { %28 = dma.hbm_to_vmem [thread:$0]  %s21_s11, 512, %s23_s13, [#allocation5], %s214_s17, %s214_s17, %s215_s18  }
   0x6   :  { %s216_s19 = smov [#allocation7]  }
   0x7   :  { %s41_s20 = sshll.u32 %s216_s19, 4  ;;  %s42_s20 = int_to_ptr.vmem [resolvable:$true] %s41_s20 }
   0x8   :  { %47 = dma.hbm_to_vmem [thread:$0]  %s40_s16, 512, %s42_s20, [#allocation8], %s214_s17, %s214_s17, %s215_s18  }
   0x9   :  { %207 = dma.done.wait [#allocation5], 512  }
   0xa   :  { %208 = vsyncadd [#allocation5], 4294966784 }
   0xb   :  { %209 = dma.done.wait [#allocation8], 512  }
   0xc   :  { %210 = vsyncadd [#allocation8], 4294966784  ;;  %v70_v0 = vld [vmem:[#allocation4] sm:$0xff]  ;;  %v71_v1 = vld [vmem:[#allocation4 + $0x8] sm:$0xff]  ;;  %s217_s0 = smov [#allocation9]   ;;  %s112_s23 = sshll.u32 %s253_s2, 4  ;;  %s113_s23 = int_to_ptr.hbm [resolvable:$true] %s112_s23 }
   0xd   :  { %v72_v2 = vld [vmem:[#allocation4 + $0x10] sm:$0xff]  ;;  %v73_v3 = vld [vmem:[#allocation4 + $0x18] sm:$0xff]  ;;  %v74_v4 = vld [vmem:[#allocation7] sm:$0xff]  ;;  %s110_s1 = sshll.u32 %s217_s0, 4  ;;  %s111_s1 = int_to_ptr.vmem [resolvable:$true] %s110_s1 }
   0xe   :  { %v75_v5 = vld [vmem:[#allocation7 + $0x8] sm:$0xff]  ;;  %v76_v6 = vld [vmem:[#allocation7 + $0x10] sm:$0xff]  ;;  %v77_v7 = vld [vmem:[#allocation7 + $0x18] sm:$0xff]  ;;  %v79_v8 = vmul.f32 %v74_v4, %v70_v0  ;;  %v89_v10 = vadd.f32 %v74_v4, %v70_v0 }
   0xf   :  { %v80_v9 = vmul.f32 %v75_v5, %v71_v1  ;;  %v90_v11 = vadd.f32 %v75_v5, %v71_v1  ;;  %v81_v12 = vmul.f32 %v76_v6, %v72_v2  ;;  %v91_v13 = vadd.f32 %v76_v6, %v72_v2 }
  0x10   :  { %v82_v14 = vmul.f32 %v77_v7, %v73_v3  ;;  %v92_v16 = vadd.f32 %v77_v7, %v73_v3 }
  0x11   :  { %v83_v15 = vadd.f32 %v80_v9, %v79_v8  ;;  %v93_v17 = vadd.f32 %v90_v11, %v89_v10 }
  0x13   :  { %v84_v18 = vadd.f32 %v83_v15, %v81_v12  ;;  %v94_v19 = vadd.f32 %v93_v17, %v91_v13 }
  0x15   :  { %v85_v20 = vadd.f32 %v84_v18, %v82_v14  ;;  %v95_v21 = vadd.f32 %v94_v19, %v92_v16 }
  0x17   :  { %102 = vst [vmem:[#allocation9] sm:$0xff] %v85_v20 }
  0x18   :  { %105 = vst [vmem:[#allocation9 + $0x8] sm:$0xff] %v95_v21 }
  0x19   :  { %118 = dma.vmem_to_hbm [thread:$0]  %s111_s1, 256, %s113_s23, [#allocation6], %s214_s17, %s214_s17, %s215_s18  }
  0x1a   :  { %211 = dma.done.wait [#allocation6], 256  }
  0x1b   :  { %212 = vsyncadd [#allocation6], 4294967040 }
  0x1c   :  { %123 = vsyncpa [#allocation5], 1 }
  0x1d   :  { %124 = vsyncpa [#allocation8], 1 }
  0x1e   :  { %125 = vsyncpa [#allocation6], 1 }

</bundles_post_ra>
